<compile_context>
chip_gen: v6e
topology: v6e:2x2x1
jax: 0.10.0
libtpu: 0.0.40
codegen_flags: <defaults>
</compile_context>

<pallas_src>
import functools

import jax
import jax.numpy as jnp
from jax.experimental import pallas as pl
from jax.experimental.pallas import tpu as pltpu


def _round_up(v, m):
    return (v + m - 1) // m * m


def _mlp_kernel(x_ref, w1_ref, b1_ref, w2_ref, b2_ref, o_ref, *,
                multilabel, valid_c):
    # x_ref:  [TB, Dp] bf16     w1_ref: [Dp, Hp] bf16 (pre-transposed)
    # b1_ref: [1, Hp]  f32      w2_ref: [Hp, Cp] bf16 (pre-transposed)
    # b2_ref: [1, Cp]  f32      o_ref:  [TB, Cp] f32
    x = x_ref[...]
    w1 = w1_ref[...]
    w2 = w2_ref[...]
    b1 = b1_ref[...]
    b2 = b2_ref[...]

    # fc1 + ReLU (bf16 MXU inputs, f32 accumulation).
    h = jnp.dot(x, w1, preferred_element_type=jnp.float32) + b1
    h = jnp.maximum(h, 0.0)

    # fc2
    logits = jnp.dot(h.astype(jnp.bfloat16), w2,
                     preferred_element_type=jnp.float32) + b2        # [TB, Cp]

    if multilabel:
        out = jax.nn.sigmoid(logits)
    else:
        cp = logits.shape[-1]
        if valid_c < cp:
            # Mask padded class lanes out of the softmax reduction.
            lane = jax.lax.broadcasted_iota(jnp.int32, logits.shape, 1)
            logits = jnp.where(lane < valid_c, logits, -jnp.inf)
        m = jnp.max(logits, axis=1, keepdims=True)
        e = jnp.exp(logits - m)
        denom = jnp.sum(e, axis=1, keepdims=True)
        out = e * pl.reciprocal(denom, approx=True)

    o_ref[...] = out.astype(o_ref.dtype)


def _mlp_forward_impl(multilabel, x, w1, b1, w2, b2):
    """multilabel: static Python bool. x: [B, D]. w1: [H, D]. w2: [C, H]."""
    B, D = x.shape
    H = w1.shape[0]
    C = w2.shape[0]

    # Lane-dense padding (last dims -> multiples of 128), batch -> multiple of TB.
    Dp = _round_up(D, 128)
    Hp = _round_up(H, 128)
    Cp = _round_up(C, 128)
    TB = 128 if B >= 128 else _round_up(B, 8)
    Bp = _round_up(B, TB)

    # One-time wrapper-side transforms (free at steady state under jit):
    # pre-transpose to [in, out], zero-pad, cast weights/activations to bf16.
    xp = jnp.zeros((Bp, Dp), jnp.bfloat16).at[:B, :D].set(x.astype(jnp.bfloat16))
    w1t = jnp.zeros((Dp, Hp), jnp.bfloat16).at[:D, :H].set(
        w1.T.astype(jnp.bfloat16))
    w2t = jnp.zeros((Hp, Cp), jnp.bfloat16).at[:H, :C].set(
        w2.T.astype(jnp.bfloat16))
    b1p = jnp.zeros((1, Hp), jnp.float32).at[:, :H].set(b1.astype(jnp.float32))
    b2p = jnp.zeros((1, Cp), jnp.float32).at[:, :C].set(b2.astype(jnp.float32))

    kernel = functools.partial(_mlp_kernel, multilabel=multilabel, valid_c=C)

    out_padded = pl.pallas_call(
        kernel,
        out_shape=jax.ShapeDtypeStruct((Bp, Cp), jnp.float32),
        grid_spec=pl.GridSpec(
            grid=(Bp // TB,),
            in_specs=[
                pl.BlockSpec((TB, Dp), lambda i: (i, 0)),   # x: tiled over batch
                pl.BlockSpec((Dp, Hp), lambda i: (0, 0)),   # w1: VMEM-resident
                pl.BlockSpec((1, Hp), lambda i: (0, 0)),    # b1: VMEM-resident
                pl.BlockSpec((Hp, Cp), lambda i: (0, 0)),   # w2: VMEM-resident
                pl.BlockSpec((1, Cp), lambda i: (0, 0)),    # b2: VMEM-resident
            ],
            out_specs=pl.BlockSpec((TB, Cp), lambda i: (i, 0)),
        ),
        compiler_params=pltpu.CompilerParams(
            # Batch tiles are independent -> megacore-shardable on v7x.
            dimension_semantics=("parallel",),
        ),
    )(xp, w1t, b1p, w2t, b2p)

    return out_padded[:B, :C]


mlp_forward = jax.jit(_mlp_forward_impl, static_argnums=0)


def _init_linear(key, out_features, in_features):
    # Deterministic init mimicking nn.Linear default: U(-1/sqrt(in), 1/sqrt(in))
    kw, kb = jax.random.split(key)
    bound = 1.0 / jnp.sqrt(jnp.float32(in_features))
    w = jax.random.uniform(kw, (out_features, in_features), jnp.float32,
                           minval=-bound, maxval=bound)
    b = jax.random.uniform(kb, (out_features,), jnp.float32,
                           minval=-bound, maxval=bound)
    return w, b


def _reference(multilabel, x, w1, b1, w2, b2):
    # Pure-JAX reference using the same bf16-matmul / f32-accumulate math.
    xb = x.astype(jnp.bfloat16)
    h = jnp.dot(xb, w1.T.astype(jnp.bfloat16),
                preferred_element_type=jnp.float32) + b1
    h = jnp.maximum(h, 0.0)
    logits = jnp.dot(h.astype(jnp.bfloat16), w2.T.astype(jnp.bfloat16),
                     preferred_element_type=jnp.float32) + b2
    return jax.nn.sigmoid(logits) if multilabel else jax.nn.softmax(logits, axis=1)


if __name__ == "__main__":
    # Small shapes implied by the module: x is [batch, num_dim]
    batch, num_dim, num_classes = 8, 32, 16
    hidden = num_dim * 2

    key = jax.random.PRNGKey(0)
    kx, k1, k2 = jax.random.split(key, 3)
    x = jax.random.normal(kx, (batch, num_dim), jnp.float32)
    w1, b1 = _init_linear(k1, hidden, num_dim)
    w2, b2 = _init_linear(k2, num_classes, hidden)

    # Note: nn.Dropout is defined in __init__ but never applied in forward().
    ok = True
    for multilabel in (True, False):
        out = mlp_forward(multilabel, x, w1, b1, w2, b2)
        out = jax.block_until_ready(out)
        ref = _reference(multilabel, x, w1, b1, w2, b2)
        ok = ok and bool(jnp.allclose(out, ref, atol=2e-3, rtol=2e-3))

    if ok:
        print("KERNEL_OK")
</pallas_src>

<mosaic_0001>
module attributes {stable_mosaic.version = 11 : i64} {
  func.func @_mlp_kernel(%arg0: i32, %arg1: memref<8x128xbf16, #tpu.memory_space<vmem>>, %arg2: memref<128x128xbf16, #tpu.memory_space<vmem>>, %arg3: memref<1x128xf32, #tpu.memory_space<vmem>>, %arg4: memref<128x128xbf16, #tpu.memory_space<vmem>>, %arg5: memref<1x128xf32, #tpu.memory_space<vmem>>, %arg6: memref<8x128xf32, #tpu.memory_space<vmem>>) attributes {dimension_semantics = [#tpu.dimension_semantics<parallel>], iteration_bounds = array<i64: 1>, scalar_prefetch = 0 : i64, scratch_operands = 0 : i64, tpu.core_type = #tpu.core_type<tc>, window_params = [{transform_indices = @transform_0, window_bounds = array<i64: 8, 128>}, {pipeline_mode = #tpu.pipeline_mode<synchronous>, transform_indices = @transform_1, window_bounds = array<i64: 128, 128>}, {pipeline_mode = #tpu.pipeline_mode<synchronous>, transform_indices = @transform_2, window_bounds = array<i64: 1, 128>}, {pipeline_mode = #tpu.pipeline_mode<synchronous>, transform_indices = @transform_3, window_bounds = array<i64: 128, 128>}, {pipeline_mode = #tpu.pipeline_mode<synchronous>, transform_indices = @transform_4, window_bounds = array<i64: 1, 128>}, {transform_indices = @transform_5, window_bounds = array<i64: 8, 128>}]} {
    %c0 = arith.constant 0 : index
    %c0_0 = arith.constant 0 : index
    %0 = vector.load %arg1[%c0, %c0_0] : memref<8x128xbf16, #tpu.memory_space<vmem>>, vector<8x128xbf16>
    %c0_1 = arith.constant 0 : index
    %c0_2 = arith.constant 0 : index
    %1 = vector.load %arg2[%c0_1, %c0_2] : memref<128x128xbf16, #tpu.memory_space<vmem>>, vector<128x128xbf16>
    %c0_3 = arith.constant 0 : index
    %c0_4 = arith.constant 0 : index
    %2 = vector.load %arg4[%c0_3, %c0_4] : memref<128x128xbf16, #tpu.memory_space<vmem>>, vector<128x128xbf16>
    %c0_5 = arith.constant 0 : index
    %c0_6 = arith.constant 0 : index
    %3 = vector.load %arg3[%c0_5, %c0_6] : memref<1x128xf32, #tpu.memory_space<vmem>>, vector<1x128xf32>
    %c0_7 = arith.constant 0 : index
    %c0_8 = arith.constant 0 : index
    %4 = vector.load %arg5[%c0_7, %c0_8] : memref<1x128xf32, #tpu.memory_space<vmem>>, vector<1x128xf32>
    %cst = arith.constant dense<0.000000e+00> : vector<8x128xf32>
    %5 = tpu.matmul %0, %1, %cst {dimension_numbers = #tpu.dot_dimension_numbers<[1], [0], [0], [1], [0, 0, 1, 1], [], []>} : vector<8x128xbf16>, vector<128x128xbf16>, vector<8x128xf32> -> vector<8x128xf32>
    %6 = vector.broadcast %3 : vector<1x128xf32> to vector<8x128xf32>
    %7 = arith.addf %5, %6 : vector<8x128xf32>
    %cst_9 = arith.constant 0.000000e+00 : f32
    %8 = vector.broadcast %cst_9 : f32 to vector<8x128xf32>
    %9 = arith.maximumf %7, %8 : vector<8x128xf32>
    %10 = arith.truncf %9 : vector<8x128xf32> to vector<8x128xbf16>
    %cst_10 = arith.constant dense<0.000000e+00> : vector<8x128xf32>
    %11 = tpu.matmul %10, %2, %cst_10 {dimension_numbers = #tpu.dot_dimension_numbers<[1], [0], [0], [1], [0, 0, 1, 1], [], []>} : vector<8x128xbf16>, vector<128x128xbf16>, vector<8x128xf32> -> vector<8x128xf32>
    %12 = vector.broadcast %4 : vector<1x128xf32> to vector<8x128xf32>
    %13 = arith.addf %11, %12 : vector<8x128xf32>
    %14 = arith.negf %13 : vector<8x128xf32>
    %15 = math.exp %14 : vector<8x128xf32>
    %cst_11 = arith.constant 1.000000e+00 : f32
    %16 = vector.broadcast %cst_11 : f32 to vector<8x128xf32>
    %17 = arith.addf %16, %15 : vector<8x128xf32>
    %18 = arith.divf %16, %17 : vector<8x128xf32>
    %c0_12 = arith.constant 0 : index
    %c0_13 = arith.constant 0 : index
    %19 = vector.load %arg6[%c0_12, %c0_13] : memref<8x128xf32, #tpu.memory_space<vmem>>, vector<8x128xf32>
    tpu.vector_store %arg6[%c0_12, %c0_13], %18 {strides = array<i32>} : memref<8x128xf32, #tpu.memory_space<vmem>>, vector<8x128xf32>,
    return
  }
  func.func @transform_0(%arg0: i32) -> (i32, i32) {
    %c0_i32 = arith.constant 0 : i32
    %c0_i32_0 = arith.constant 0 : i32
    return %arg0, %c0_i32 : i32, i32
  }
  func.func @transform_1(%arg0: i32) -> (i32, i32) {
    %c0_i32 = arith.constant 0 : i32
    %c0_i32_0 = arith.constant 0 : i32
    %c0_i32_1 = arith.constant 0 : i32
    return %c0_i32, %c0_i32_0 : i32, i32
  }
  func.func @transform_2(%arg0: i32) -> (i32, i32) {
    %c0_i32 = arith.constant 0 : i32
    %c0_i32_0 = arith.constant 0 : i32
    %c0_i32_1 = arith.constant 0 : i32
    return %c0_i32, %c0_i32_0 : i32, i32
  }
  func.func @transform_3(%arg0: i32) -> (i32, i32) {
    %c0_i32 = arith.constant 0 : i32
    %c0_i32_0 = arith.constant 0 : i32
    %c0_i32_1 = arith.constant 0 : i32
    return %c0_i32, %c0_i32_0 : i32, i32
  }
  func.func @transform_4(%arg0: i32) -> (i32, i32) {
    %c0_i32 = arith.constant 0 : i32
    %c0_i32_0 = arith.constant 0 : i32
    %c0_i32_1 = arith.constant 0 : i32
    return %c0_i32, %c0_i32_0 : i32, i32
  }
  func.func @transform_5(%arg0: i32) -> (i32, i32) {
    %c0_i32 = arith.constant 0 : i32
    %c0_i32_0 = arith.constant 0 : i32
    return %arg0, %c0_i32 : i32, i32
  }
}

</mosaic_0001>

<bundles_post_ra>
// kernel: _mlp_forward_impl.1
= control target key start
LH: loop header
LB: loop body
LE: loop exit
PB: predicated region body
PF: predicated region fallthrough
CT: control target
= control target key end

     0   :  { %v390_v1 = vmov 0.0   ;;  %vm391_vm0 = vmmov 0   ;;  %s483_s0 = inlined_call_operand.vmem [shape: bf16[8,128], index: 0, kind: input, shape index: {}]   ;;  %s484_s1 = inlined_call_operand.vmem [shape: bf16[128,128], index: 1, kind: input, shape index: {}]   ;;  %s485_s2 = inlined_call_operand.vmem [shape: f32[1,128], index: 2, kind: input, shape index: {}]   ;;  %s486_s3 = inlined_call_operand.vmem [shape: bf16[128,128], index: 3, kind: input, shape index: {}]   ;;  %s487_s4 = inlined_call_operand.vmem [shape: f32[1,128], index: 4, kind: input, shape index: {}]   ;;  %s488_s5 = inlined_call_operand.hbm [shape: f32[8,128], index: 5, kind: output, shape index: {}]  }
   0x1   :  { %v348_v0 = vld [vmem:[%s484_s1 + $0x38] sm:$0xff]   ;;  %305 = vmatprep.subr.bf16.mxu0 %v390_v1  ;;  %325 = vmatprep.subr.bf16.mxu1 %v390_v1  ;;  %v349_v2 = vld [vmem:[%s484_s1 + $0x30] sm:$0xff]   ;;  %v350_v3 = vld [vmem:[%s484_s1 + $0x28] sm:$0xff]  }
   0x2   :  { %306 = vmatpush3.bf16.msra.mxu0 %v348_v0  ;;  %321 = vmatprep.mubr.msk.bf16.mxu0 %vm391_vm0, %v390_v1  ;;  %v356_v4 = vld [vmem:[%s486_s3 + $0x38] sm:$0xff]   ;;  %v351_v5 = vld [vmem:[%s484_s1 + $0x20] sm:$0xff]   ;;  %v357_v6 = vld [vmem:[%s486_s3 + $0x30] sm:$0xff]  }
   0x3   :  { %307 = vmatprep.subr.bf16.mxu0 %v390_v1  ;;  %341 = vmatprep.mubr.msk.bf16.mxu1 %vm391_vm0, %v390_v1  ;;  %v352_v7 = vld [vmem:[%s484_s1 + $0x18] sm:$0xff]   ;;  %v358_v8 = vld [vmem:[%s486_s3 + $0x28] sm:$0xff]  }
   0x4   :  { %326 = vmatpush3.bf16.msra.mxu1 %v356_v4 }
   0x5   :  { %327 = vmatprep.subr.bf16.mxu1 %v390_v1 }
   0x6   :  { %308 = vmatpush3.bf16.msra.mxu0 %v349_v2 }
   0x7   :  { %309 = vmatprep.subr.bf16.mxu0 %v390_v1 }
   0x8   :  { %328 = vmatpush3.bf16.msra.mxu1 %v357_v6 }
   0x9   :  { %329 = vmatprep.subr.bf16.mxu1 %v390_v1 }
   0xa   :  { %310 = vmatpush3.bf16.msra.mxu0 %v350_v3 }
   0xb   :  { %311 = vmatprep.subr.bf16.mxu0 %v390_v1 }
   0xe   :  { %312 = vmatpush3.bf16.msra.mxu0 %v351_v5 }
   0xf   :  { %313 = vmatprep.subr.bf16.mxu0 %v390_v1 }
  0x10   :  { %10 = vsyncpa [#allocation3], 0  ;;  %v353_v9 = vld [vmem:[%s484_s1 + $0x10] sm:$0xff]   ;;  %330 = vmatpush3.bf16.msra.mxu1 %v358_v8  ;;  %v359_v10 = vld [vmem:[%s486_s3 + $0x20] sm:$0xff]  }
  0x11   :  { %331 = vmatprep.subr.bf16.mxu1 %v390_v1  ;;  %v354_v11 = vld [vmem:[%s484_s1 + $0x8] sm:$0xff]   ;;  %v360_v12 = vld [vmem:[%s486_s3 + $0x18] sm:$0xff]   ;;  %v355_v13 = vld [vmem:[%s484_s1] sm:$0xff]  }
  0x12   :  { %314 = vmatpush3.bf16.msra.mxu0 %v352_v7  ;;  %v361_v14 = vld [vmem:[%s486_s3 + $0x10] sm:$0xff]   ;;  %v22_v15 = vld [vmem:[%s483_s0] sm:$0xf]  ;;  %v362_v16 = vld [vmem:[%s486_s3 + $0x8] sm:$0xff]  }
  0x13   :  { %315 = vmatprep.subr.bf16.mxu0 %v390_v1  ;;  %v363_v17 = vld [vmem:[%s486_s3] sm:$0xff]  }
  0x14   :  { %332 = vmatpush3.bf16.msra.mxu1 %v359_v10  ;;  %v268_v18 = vld [vmem:[%s485_s2] ss:$0 sm:$0xff]  ;;  %s392_s2 = smov [#allocation2]  }
  0x15   :  { %333 = vmatprep.subr.bf16.mxu1 %v390_v1  ;;  %v277_v26 = vld [vmem:[%s487_s4] ss:$0 sm:$0xff]  ;;  %s260_s3 = sshll.u32 %s392_s2, 4  ;;  %s261_s3 = int_to_ptr.vmem [resolvable:$true] %s260_s3 }
  0x16   :  { %316 = vmatpush3.bf16.msra.mxu0 %v353_v9  ;;  %s368_s29 = scalar_lea.vmem %s261_s3, 128  ;;  %p373_p1 = scmp.lt.s32.totalorder %s261_s3, %s261_s3 }
  0x17   :  { %317 = vmatprep.subr.bf16.mxu0 %v390_v1  ;;  %p369_p0 = scmp.ne.s32.totalorder %s261_s3, %s368_s29  ;;  %p374_p2 = scmp.lt.s32.totalorder %s368_s29, %s368_s29 }
  0x18   :  { %334 = vmatpush3.bf16.msra.mxu1 %v360_v12 }
  0x19   :  { %335 = vmatprep.subr.bf16.mxu1 %v390_v1  ;;  %p375_p3 = por %p374_p2, %p373_p1 }
  0x1a   :  { %318 = vmatpush3.bf16.msra.mxu0 %v354_v11 }
  0x1b   :  { %319 = vmatprep.subr.bf16.mxu0 %v390_v1  ;;  %p376_p4 = pnand %p375_p3, %p369_p0 }
  0x1c   :  { %336 = vmatpush3.bf16.msra.mxu1 %v361_v14 }
  0x1d   :  { %337 = vmatprep.subr.bf16.mxu1 %v390_v1 }
  0x1e   :  { %320 = vmatpush3.bf16.msra.mxu0 %v355_v13 }
  0x20   :  { %338 = vmatpush3.bf16.msra.mxu1 %v362_v16 }
  0x21   :  { %322 = vmatmul.mubr.bf16.vlgmr.msra.gmra.mxu0 %v22_v15  ;;  %339 = vmatprep.subr.bf16.mxu1 %v390_v1 }
  0x24   :  { %340 = vmatpush3.bf16.msra.mxu1 %v363_v17 }
  0xe1   :  { %v145_v19 = vpop.f32.mrf.mxu0 }
  0xe2   :  { %v146_v20 = vadd.f32 %v268_v18, %v145_v19 }
  0xe3   :  { %v323_v21 = vpop.f32.mrf.mxu0 }
  0xe4   :  { %v151_v22 = vmax.f32 %v146_v20, 0.0 }
  0xe5   :  { %v148_v23 = vpop.f32.mrf.mxu0 }
  0xe6   :  { %v152_v24 = vpack.c.bf16 %v151_v22, %v151_v22 }
  0xe7   :  { %v324_v25 = vpop.f32.mrf.mxu0 }
  0xe8   :  { %342 = vmatmul.mubr.bf16.vlgmr.msra.gmra.mxu1 %v152_v24 }
 0x1a8   :  { %v241_v27 = vpop.f32.mrf.mxu1 }
 0x1a9   :  { %v242_v28 = vadd.f32 %v277_v26, %v241_v27 }
 0x1aa   :  { %v343_v29 = vpop.f32.mrf.mxu1 }
 0x1ab   :  { %v286_v30 = vmul.f32 -1.442695, %v242_v28 }
 0x1ac   :  { %v244_v31 = vpop.f32.mrf.mxu1 }
 0x1ad   :  { %364 = vpow2.f32 %v286_v30 }
 0x1ae   :  { %v344_v32 = vpop.f32.mrf.mxu1 }
 0x1ba   :  { %v365_v33 = vpop.eup %364 }
 0x1bb   :  { %v250_v34 = vadd.f32 1.0, %v365_v33 }
 0x1bd   :  { %366 = vrcp.f32 %v250_v34 }
 0x1ca   :  { %v367_v35 = vpop.eup %366 }
 0x1cb   :  { %253 = vst [vmem:[#allocation2] sm:$0xff] %v367_v35 }
 0x1cc   :  { %379 = shalt.err (!%p376_p4)
}
 0x1cd   :  { %263 = dma.vmem_to_hbm [thread:$0]  %s261_s3, 128, %s488_s5, [#allocation3]  }
 0x1ce   :  { %388 = dma.done.wait [#allocation3], 128  }
 0x1cf   :  { %389 = vsyncadd [#allocation3], 4294967168 }
 0x1d0   :  { %267 = vsyncpa [#allocation3], 1 }

</bundles_post_ra>
